<compile_context>
chip_gen: v7x
topology: tpu7x:2x2x1
jax: 0.10.0
libtpu: 0.0.40
codegen_flags: <defaults>
</compile_context>

<pallas_src>
import jax
import jax.numpy as jnp
from jax.experimental import pallas as pl
from jax.experimental.pallas import tpu as pltpu


def _round_up(x, m):
    return (x + m - 1) // m * m


def _tile_bytes(rows, cols, itemsize):
    """VMEM bytes of a (rows, cols) slab including (sublane, 128) padding."""
    sub = max(8, 32 // itemsize)
    return _round_up(rows, sub) * _round_up(cols, 128) * itemsize


def conv_norm_activation(x, weight, gamma, beta, *, stride=2, padding=1,
                         eps=1e-5, compute_dtype=jnp.bfloat16, out_dtype=None):
    """x: [N, Cin, H, W] (NCHW), weight: [Cout, Cin, kh, kw] (OIHW).

    compute_dtype: dtype fed to the MXU for activations/weights (f32 accum
    regardless). bf16 halves DMA bytes on v5e/v6e/v7x; use jnp.float32 for
    bit-tight checks.
    """
    if out_dtype is None:
        out_dtype = x.dtype
    N, Cin, H, W = x.shape
    Cout, _, kh, kw = weight.shape
    s = stride
    Ho = (H + 2 * padding - kh) // s + 1
    Wo = (W + 2 * padding - kw) // s + 1
    qh, qw = (kh - 1) // s, (kw - 1) // s        # max in-plane tap offsets
    Hs, Ws = Ho + qh, Wo + qw                    # plane extent the taps touch
    C4 = s * s * Cin                             # channels after space-to-depth
    HoWo = Ho * Wo
    Mrow = _round_up(HoWo, 8)                    # sublane-aligned rows / image

    # lane-dense Cout tiling
    tn = 128 if Cout <= 128 else 256
    Coutp = _round_up(Cout, tn)
    CB = Coutp // tn

    # ---- XLA glue: NCHW -> NHWC, pad, space-to-depth into parity planes ----
    # planes[n, r, c, (a*s + b)*Cin + ci] = x_padded[n, s*r + a, s*c + b, ci]
    xh = jnp.transpose(x, (0, 2, 3, 1)).astype(compute_dtype)
    pad_h = max(0, s * Hs - (H + padding))
    pad_w = max(0, s * Ws - (W + padding))
    xp = jnp.pad(xh, ((0, 0), (padding, pad_h), (padding, pad_w), (0, 0)))
    xp = xp[:, :s * Hs, :s * Ws, :]
    planes = xp.reshape(N, Hs, s, Ws, s, Cin)
    planes = jnp.transpose(planes, (0, 1, 3, 2, 4, 5)).reshape(N, Hs, Ws, C4)

    # weight -> per-tap [kh*kw, Cin, Coutp], tap t = di*kw + dj
    wt = jnp.transpose(weight, (2, 3, 1, 0)).reshape(kh * kw, Cin, Cout)
    wt = jnp.pad(wt, ((0, 0), (0, 0), (0, Coutp - Cout))).astype(compute_dtype)

    # ---- kernels (close over static geometry) ------------------------------
    def conv_tile(x_ref, w_ref):
        xs = x_ref[...]                              # (Hs, Ws, C4)
        acc = jnp.zeros((HoWo, tn), jnp.float32)
        for di in range(kh):
            for dj in range(kw):
                p = (di % s) * s + (dj % s)          # parity-plane index
                lhs = xs[di // s:di // s + Ho,
                         dj // s:dj // s + Wo,
                         p * Cin:(p + 1) * Cin].reshape(HoWo, Cin)
                acc = acc + jnp.dot(lhs, w_ref[di * kw + dj],
                                    preferred_element_type=jnp.float32)
        return acc

    def conv_stats_kernel(x_ref, w_ref, psum_ref, pssq_ref):
        y = conv_tile(x_ref, w_ref)
        psum_ref[0] = jnp.sum(y, axis=0, keepdims=True)
        pssq_ref[0] = jnp.sum(y * y, axis=0, keepdims=True)

    def conv_bn_relu_kernel(x_ref, w_ref, scale_ref, shift_ref, o_ref):
        y = conv_tile(x_ref, w_ref)
        o = jnp.maximum(y * scale_ref[...] + shift_ref[...], 0.0)
        if Mrow != HoWo:                             # trace-time constant
            o = jnp.concatenate(
                [o, jnp.zeros((Mrow - HoWo, tn), jnp.float32)], axis=0)
        o_ref[...] = o.astype(o_ref.dtype)

    # ---- BlockSpecs ---------------------------------------------------------
    planes_spec = pl.BlockSpec((None, Hs, Ws, C4), lambda n, j: (n, 0, 0, 0))
    w_shape = (kh * kw, Cin, tn)
    w_index = lambda n, j: (0, 0, j)
    w_spec = pl.BlockSpec(w_shape, w_index)
    w_bufs = 2
    if CB == 1:
        try:  # constant block index -> double-buffering buys nothing
            w_spec = pl.BlockSpec(w_shape, w_index, pipeline_mode=pl.Buffered(1))
            w_bufs = 1
        except Exception:
            pass

    # ---- VMEM budget (includes internal (sublane,128) padding) -------------
    bpe = jnp.dtype(compute_dtype).itemsize
    obpe = jnp.dtype(out_dtype).itemsize
    planes_blk = Hs * _tile_bytes(Ws, C4, bpe)
    w_blk = kh * kw * _tile_bytes(Cin, tn, bpe)
    out_blk = _tile_bytes(Mrow, tn, obpe)
    acc_blk = _tile_bytes(Mrow, tn, 4)
    vmem_need = (2 * planes_blk + w_bufs * w_blk + 2 * out_blk
                 + 2 * acc_blk + 4 * _tile_bytes(1, Coutp, 4))
    try:
        vmem_cap = int(pltpu.get_tpu_info().vmem_capacity_bytes)
    except Exception:
        vmem_cap = 64 * 1024 * 1024
    vmem_limit = int(min(max(2 * vmem_need, 32 * 1024 * 1024),
                         (3 * vmem_cap) // 4))
    cparams = pltpu.CompilerParams(
        dimension_semantics=("parallel", "parallel"),
        vmem_limit_bytes=vmem_limit)

    # ---- pass 1: per-image partial channel statistics -----------------------
    psum, pssq = pl.pallas_call(
        conv_stats_kernel,
        out_shape=(jax.ShapeDtypeStruct((N, 1, Coutp), jnp.float32),
                   jax.ShapeDtypeStruct((N, 1, Coutp), jnp.float32)),
        grid=(N, CB),
        in_specs=[planes_spec, w_spec],
        out_specs=(pl.BlockSpec((1, 1, tn), lambda n, j: (n, 0, j)),
                   pl.BlockSpec((1, 1, tn), lambda n, j: (n, 0, j))),
        compiler_params=cparams,
    )(planes, wt)

    # ---- glue: BN batch stats (Chan parallel-variance merge over images) ---
    m_t = jnp.float32(HoWo)
    m_tot = jnp.float32(N * HoWo)
    sum_nc = psum[:, 0, :Cout]
    ssq_nc = pssq[:, 0, :Cout]
    mean_nc = sum_nc / m_t
    m2_nc = jnp.maximum(ssq_nc - sum_nc * mean_nc, 0.0)
    mean = jnp.sum(sum_nc, axis=0) / m_tot
    m2 = jnp.sum(m2_nc, axis=0) + m_t * jnp.sum((mean_nc - mean) ** 2, axis=0)
    var = jnp.maximum(m2 / m_tot, 0.0)             # biased var, as BN uses
    scale = gamma.astype(jnp.float32) / jnp.sqrt(var + eps)
    shift = beta.astype(jnp.float32) - mean * scale
    scale_p = jnp.zeros((1, Coutp), jnp.float32).at[0, :Cout].set(scale)
    shift_p = jnp.zeros((1, Coutp), jnp.float32).at[0, :Cout].set(shift)

    # ---- pass 2: fused conv + BN affine + ReLU (lane-dense output) ----------
    out3 = pl.pallas_call(
        conv_bn_relu_kernel,
        out_shape=jax.ShapeDtypeStruct((N, Mrow, Coutp), out_dtype),
        grid=(N, CB),
        in_specs=[planes_spec, w_spec,
                  pl.BlockSpec((1, tn), lambda n, j: (0, j)),
                  pl.BlockSpec((1, tn), lambda n, j: (0, j))],
        out_specs=pl.BlockSpec((None, Mrow, tn), lambda n, j: (n, 0, j)),
        compiler_params=cparams,
    )(planes, wt, scale_p, shift_p)

    out = out3[:, :HoWo, :Cout].reshape(N, Ho, Wo, Cout)
    return jnp.transpose(out, (0, 3, 1, 2))         # back to NCHW (module I/O)


def _reference(x, weight, gamma, beta, *, stride=2, padding=1, eps=1e-5):
    """Pure-JAX reference of Conv2d -> BatchNorm2d(train) -> ReLU."""
    y = jax.lax.conv_general_dilated(
        x, weight, window_strides=(stride, stride),
        padding=((padding, padding), (padding, padding)),
        dimension_numbers=("NCHW", "OIHW", "NCHW"))
    mean = y.mean(axis=(0, 2, 3), keepdims=True)
    var = y.var(axis=(0, 2, 3), keepdims=True)       # biased, like BN
    yn = (y - mean) / jnp.sqrt(var + eps)
    yn = yn * gamma.reshape(1, -1, 1, 1) + beta.reshape(1, -1, 1, 1)
    return jnp.maximum(yn, 0.0)


if __name__ == "__main__":
    # Module config: feat_in=4, feat_out=8, kernel_size=3, stride=2,
    # padding=1, bias=False, Norm=BatchNorm2d, Activation=ReLU.
    N, Cin, H, W = 2, 4, 16, 16
    Cout, kh, kw = 8, 3, 3

    key = jax.random.PRNGKey(0)
    kx, kw_, kg, kb = jax.random.split(key, 4)
    x = jax.random.normal(kx, (N, Cin, H, W), dtype=jnp.float32)
    weight = jax.random.normal(kw_, (Cout, Cin, kh, kw), dtype=jnp.float32) * 0.1
    gamma = jax.random.uniform(kg, (Cout,), dtype=jnp.float32,
                               minval=0.5, maxval=1.5)
    beta = jax.random.normal(kb, (Cout,), dtype=jnp.float32) * 0.1

    ref = _reference(x, weight, gamma, beta)

    # exact-math path (f32 operands)
    out_f32 = jax.block_until_ready(
        conv_norm_activation(x, weight, gamma, beta,
                             compute_dtype=jnp.float32))
    assert out_f32.shape == (N, Cout, H // 2, W // 2), out_f32.shape
    assert jnp.allclose(out_f32, ref, atol=1e-3, rtol=1e-3), \
        float(jnp.max(jnp.abs(out_f32 - ref)))

    # default bf16-fed MXU path (perf configuration)
    out_bf = jax.block_until_ready(conv_norm_activation(x, weight, gamma, beta))
    assert out_bf.shape == (N, Cout, H // 2, W // 2), out_bf.shape
    assert jnp.allclose(out_bf, ref, atol=6e-2, rtol=6e-2), \
        float(jnp.max(jnp.abs(out_bf - ref)))

    print("KERNEL_OK")
</pallas_src>

<mosaic_0001>
module attributes {stable_mosaic.version = 11 : i64} {
  func.func @conv_stats_kernel(%arg0: i32, %arg1: i32, %arg2: memref<1x9x9x16xf32, #tpu.memory_space<vmem>>, %arg3: memref<9x4x128xf32, #tpu.memory_space<vmem>>, %arg4: memref<1x1x128xf32, #tpu.memory_space<vmem>>, %arg5: memref<1x1x128xf32, #tpu.memory_space<vmem>>) attributes {dimension_semantics = [#tpu.dimension_semantics<parallel>, #tpu.dimension_semantics<parallel>], iteration_bounds = array<i64: 2, 1>, scalar_prefetch = 0 : i64, scratch_operands = 0 : i64, tpu.core_type = #tpu.core_type<tc>, window_params = [{transform_indices = @transform_0, window_bounds = array<i64: 1, 9, 9, 16>}, {pipeline_mode = #tpu.pipeline_mode<synchronous>, transform_indices = @transform_1, window_bounds = array<i64: 9, 4, 128>}, {transform_indices = @transform_2, window_bounds = array<i64: 1, 1, 128>}, {transform_indices = @transform_3, window_bounds = array<i64: 1, 1, 128>}]} {
    %c0 = arith.constant 0 : index
    %c0_0 = arith.constant 0 : index
    %c0_1 = arith.constant 0 : index
    %c0_2 = arith.constant 0 : index
    %0 = vector.load %arg2[%c0, %c0_0, %c0_1, %c0_2] : memref<1x9x9x16xf32, #tpu.memory_space<vmem>>, vector<1x9x9x16xf32>
    %1 = vector.shape_cast %0 : vector<1x9x9x16xf32> to vector<9x9x16xf32>
    %cst = arith.constant 0.000000e+00 : f32
    %2 = vector.broadcast %cst : f32 to vector<64x128xf32>
    %3 = vector.extract_strided_slice %1 {offsets = [0, 0, 0], sizes = [8, 8, 4], strides = [1, 1, 1]} : vector<9x9x16xf32> to vector<8x8x4xf32>
    %4 = vector.shape_cast %3 : vector<8x8x4xf32> to vector<64x4xf32>
    %c0_3 = arith.constant 0 : index
    %c0_4 = arith.constant 0 : index
    %c0_5 = arith.constant 0 : index
    %5 = vector.load %arg3[%c0_3, %c0_4, %c0_5] : memref<9x4x128xf32, #tpu.memory_space<vmem>>, vector<1x4x128xf32>
    %6 = vector.shape_cast %5 : vector<1x4x128xf32> to vector<4x128xf32>
    %cst_6 = arith.constant dense<0.000000e+00> : vector<64x128xf32>
    %7 = tpu.matmul %4, %6, %cst_6 {dimension_numbers = #tpu.dot_dimension_numbers<[1], [0], [0], [1], [0, 0, 1, 1], [], []>} : vector<64x4xf32>, vector<4x128xf32>, vector<64x128xf32> -> vector<64x128xf32>
    %8 = arith.addf %2, %7 : vector<64x128xf32>
    %9 = vector.extract_strided_slice %1 {offsets = [0, 0, 4], sizes = [8, 8, 4], strides = [1, 1, 1]} : vector<9x9x16xf32> to vector<8x8x4xf32>
    %10 = vector.shape_cast %9 : vector<8x8x4xf32> to vector<64x4xf32>
    %c1 = arith.constant 1 : index
    %c0_7 = arith.constant 0 : index
    %c0_8 = arith.constant 0 : index
    %11 = vector.load %arg3[%c1, %c0_7, %c0_8] : memref<9x4x128xf32, #tpu.memory_space<vmem>>, vector<1x4x128xf32>
    %12 = vector.shape_cast %11 : vector<1x4x128xf32> to vector<4x128xf32>
    %cst_9 = arith.constant dense<0.000000e+00> : vector<64x128xf32>
    %13 = tpu.matmul %10, %12, %cst_9 {dimension_numbers = #tpu.dot_dimension_numbers<[1], [0], [0], [1], [0, 0, 1, 1], [], []>} : vector<64x4xf32>, vector<4x128xf32>, vector<64x128xf32> -> vector<64x128xf32>
    %14 = arith.addf %8, %13 : vector<64x128xf32>
    %15 = vector.extract_strided_slice %1 {offsets = [0, 1, 0], sizes = [8, 8, 4], strides = [1, 1, 1]} : vector<9x9x16xf32> to vector<8x8x4xf32>
    %16 = vector.shape_cast %15 : vector<8x8x4xf32> to vector<64x4xf32>
    %c2 = arith.constant 2 : index
    %c0_10 = arith.constant 0 : index
    %c0_11 = arith.constant 0 : index
    %17 = vector.load %arg3[%c2, %c0_10, %c0_11] : memref<9x4x128xf32, #tpu.memory_space<vmem>>, vector<1x4x128xf32>
    %18 = vector.shape_cast %17 : vector<1x4x128xf32> to vector<4x128xf32>
    %cst_12 = arith.constant dense<0.000000e+00> : vector<64x128xf32>
    %19 = tpu.matmul %16, %18, %cst_12 {dimension_numbers = #tpu.dot_dimension_numbers<[1], [0], [0], [1], [0, 0, 1, 1], [], []>} : vector<64x4xf32>, vector<4x128xf32>, vector<64x128xf32> -> vector<64x128xf32>
    %20 = arith.addf %14, %19 : vector<64x128xf32>
    %21 = vector.extract_strided_slice %1 {offsets = [0, 0, 8], sizes = [8, 8, 4], strides = [1, 1, 1]} : vector<9x9x16xf32> to vector<8x8x4xf32>
    %22 = vector.shape_cast %21 : vector<8x8x4xf32> to vector<64x4xf32>
    %c3 = arith.constant 3 : index
    %c0_13 = arith.constant 0 : index
    %c0_14 = arith.constant 0 : index
    %23 = vector.load %arg3[%c3, %c0_13, %c0_14] : memref<9x4x128xf32, #tpu.memory_space<vmem>>, vector<1x4x128xf32>
    %24 = vector.shape_cast %23 : vector<1x4x128xf32> to vector<4x128xf32>
    %cst_15 = arith.constant dense<0.000000e+00> : vector<64x128xf32>
    %25 = tpu.matmul %22, %24, %cst_15 {dimension_numbers = #tpu.dot_dimension_numbers<[1], [0], [0], [1], [0, 0, 1, 1], [], []>} : vector<64x4xf32>, vector<4x128xf32>, vector<64x128xf32> -> vector<64x128xf32>
    %26 = arith.addf %20, %25 : vector<64x128xf32>
    %27 = vector.extract_strided_slice %1 {offsets = [0, 0, 12], sizes = [8, 8, 4], strides = [1, 1, 1]} : vector<9x9x16xf32> to vector<8x8x4xf32>
    %28 = vector.shape_cast %27 : vector<8x8x4xf32> to vector<64x4xf32>
    %c4 = arith.constant 4 : index
    %c0_16 = arith.constant 0 : index
    %c0_17 = arith.constant 0 : index
    %29 = vector.load %arg3[%c4, %c0_16, %c0_17] : memref<9x4x128xf32, #tpu.memory_space<vmem>>, vector<1x4x128xf32>
    %30 = vector.shape_cast %29 : vector<1x4x128xf32> to vector<4x128xf32>
    %cst_18 = arith.constant dense<0.000000e+00> : vector<64x128xf32>
    %31 = tpu.matmul %28, %30, %cst_18 {dimension_numbers = #tpu.dot_dimension_numbers<[1], [0], [0], [1], [0, 0, 1, 1], [], []>} : vector<64x4xf32>, vector<4x128xf32>, vector<64x128xf32> -> vector<64x128xf32>
    %32 = arith.addf %26, %31 : vector<64x128xf32>
    %33 = vector.extract_strided_slice %1 {offsets = [0, 1, 8], sizes = [8, 8, 4], strides = [1, 1, 1]} : vector<9x9x16xf32> to vector<8x8x4xf32>
    %34 = vector.shape_cast %33 : vector<8x8x4xf32> to vector<64x4xf32>
    %c5 = arith.constant 5 : index
    %c0_19 = arith.constant 0 : index
    %c0_20 = arith.constant 0 : index
    %35 = vector.load %arg3[%c5, %c0_19, %c0_20] : memref<9x4x128xf32, #tpu.memory_space<vmem>>, vector<1x4x128xf32>
    %36 = vector.shape_cast %35 : vector<1x4x128xf32> to vector<4x128xf32>
    %cst_21 = arith.constant dense<0.000000e+00> : vector<64x128xf32>
    %37 = tpu.matmul %34, %36, %cst_21 {dimension_numbers = #tpu.dot_dimension_numbers<[1], [0], [0], [1], [0, 0, 1, 1], [], []>} : vector<64x4xf32>, vector<4x128xf32>, vector<64x128xf32> -> vector<64x128xf32>
    %38 = arith.addf %32, %37 : vector<64x128xf32>
    %39 = vector.extract_strided_slice %1 {offsets = [1, 0, 0], sizes = [8, 8, 4], strides = [1, 1, 1]} : vector<9x9x16xf32> to vector<8x8x4xf32>
    %40 = vector.shape_cast %39 : vector<8x8x4xf32> to vector<64x4xf32>
    %c6 = arith.constant 6 : index
    %c0_22 = arith.constant 0 : index
    %c0_23 = arith.constant 0 : index
    %41 = vector.load %arg3[%c6, %c0_22, %c0_23] : memref<9x4x128xf32, #tpu.memory_space<vmem>>, vector<1x4x128xf32>
    %42 = vector.shape_cast %41 : vector<1x4x128xf32> to vector<4x128xf32>
    %cst_24 = arith.constant dense<0.000000e+00> : vector<64x128xf32>
    %43 = tpu.matmul %40, %42, %cst_24 {dimension_numbers = #tpu.dot_dimension_numbers<[1], [0], [0], [1], [0, 0, 1, 1], [], []>} : vector<64x4xf32>, vector<4x128xf32>, vector<64x128xf32> -> vector<64x128xf32>
    %44 = arith.addf %38, %43 : vector<64x128xf32>
    %45 = vector.extract_strided_slice %1 {offsets = [1, 0, 4], sizes = [8, 8, 4], strides = [1, 1, 1]} : vector<9x9x16xf32> to vector<8x8x4xf32>
    %46 = vector.shape_cast %45 : vector<8x8x4xf32> to vector<64x4xf32>
    %c7 = arith.constant 7 : index
    %c0_25 = arith.constant 0 : index
    %c0_26 = arith.constant 0 : index
    %47 = vector.load %arg3[%c7, %c0_25, %c0_26] : memref<9x4x128xf32, #tpu.memory_space<vmem>>, vector<1x4x128xf32>
    %48 = vector.shape_cast %47 : vector<1x4x128xf32> to vector<4x128xf32>
    %cst_27 = arith.constant dense<0.000000e+00> : vector<64x128xf32>
    %49 = tpu.matmul %46, %48, %cst_27 {dimension_numbers = #tpu.dot_dimension_numbers<[1], [0], [0], [1], [0, 0, 1, 1], [], []>} : vector<64x4xf32>, vector<4x128xf32>, vector<64x128xf32> -> vector<64x128xf32>
    %50 = arith.addf %44, %49 : vector<64x128xf32>
    %51 = vector.extract_strided_slice %1 {offsets = [1, 1, 0], sizes = [8, 8, 4], strides = [1, 1, 1]} : vector<9x9x16xf32> to vector<8x8x4xf32>
    %52 = vector.shape_cast %51 : vector<8x8x4xf32> to vector<64x4xf32>
    %c8 = arith.constant 8 : index
    %c0_28 = arith.constant 0 : index
    %c0_29 = arith.constant 0 : index
    %53 = vector.load %arg3[%c8, %c0_28, %c0_29] : memref<9x4x128xf32, #tpu.memory_space<vmem>>, vector<1x4x128xf32>
    %54 = vector.shape_cast %53 : vector<1x4x128xf32> to vector<4x128xf32>
    %cst_30 = arith.constant dense<0.000000e+00> : vector<64x128xf32>
    %55 = tpu.matmul %52, %54, %cst_30 {dimension_numbers = #tpu.dot_dimension_numbers<[1], [0], [0], [1], [0, 0, 1, 1], [], []>} : vector<64x4xf32>, vector<4x128xf32>, vector<64x128xf32> -> vector<64x128xf32>
    %56 = arith.addf %50, %55 : vector<64x128xf32>
    %cst_31 = arith.constant dense<0.000000e+00> : vector<128xf32>
    %57 = vector.multi_reduction <add>, %56, %cst_31 [0] : vector<64x128xf32> to vector<128xf32>
    %58 = vector.shape_cast %57 : vector<128xf32> to vector<1x128xf32>
    %c0_32 = arith.constant 0 : index
    %c0_33 = arith.constant 0 : index
    %c0_34 = arith.constant 0 : index
    %59 = vector.load %arg4[%c0_32, %c0_33, %c0_34] : memref<1x1x128xf32, #tpu.memory_space<vmem>>, vector<1x1x128xf32>
    %60 = vector.shape_cast %59 : vector<1x1x128xf32> to vector<1x128xf32>
    %61 = vector.shape_cast %58 : vector<1x128xf32> to vector<1x1x128xf32>
    tpu.vector_store %arg4[%c0_32, %c0_33, %c0_34], %61 {strides = array<i32>} : memref<1x1x128xf32, #tpu.memory_space<vmem>>, vector<1x1x128xf32>,
    %62 = arith.mulf %56, %56 : vector<64x128xf32>
    %cst_35 = arith.constant dense<0.000000e+00> : vector<128xf32>
    %63 = vector.multi_reduction <add>, %62, %cst_35 [0] : vector<64x128xf32> to vector<128xf32>
    %64 = vector.shape_cast %63 : vector<128xf32> to vector<1x128xf32>
    %c0_36 = arith.constant 0 : index
    %c0_37 = arith.constant 0 : index
    %c0_38 = arith.constant 0 : index
    %65 = vector.load %arg5[%c0_36, %c0_37, %c0_38] : memref<1x1x128xf32, #tpu.memory_space<vmem>>, vector<1x1x128xf32>
    %66 = vector.shape_cast %65 : vector<1x1x128xf32> to vector<1x128xf32>
    %67 = vector.shape_cast %64 : vector<1x128xf32> to vector<1x1x128xf32>
    tpu.vector_store %arg5[%c0_36, %c0_37, %c0_38], %67 {strides = array<i32>} : memref<1x1x128xf32, #tpu.memory_space<vmem>>, vector<1x1x128xf32>,
    return
  }
  func.func @transform_0(%arg0: i32, %arg1: i32) -> (i32, i32, i32, i32) {
    %c0_i32 = arith.constant 0 : i32
    %c0_i32_0 = arith.constant 0 : i32
    %c0_i32_1 = arith.constant 0 : i32
    %c0_i32_2 = arith.constant 0 : i32
    return %arg0, %c0_i32, %c0_i32_0, %c0_i32_1 : i32, i32, i32, i32
  }
  func.func @transform_1(%arg0: i32, %arg1: i32) -> (i32, i32, i32) {
    %c0_i32 = arith.constant 0 : i32
    %c0_i32_0 = arith.constant 0 : i32
    %c0_i32_1 = arith.constant 0 : i32
    return %c0_i32, %c0_i32_0, %arg1 : i32, i32, i32
  }
  func.func @transform_2(%arg0: i32, %arg1: i32) -> (i32, i32, i32) {
    %c0_i32 = arith.constant 0 : i32
    %c0_i32_0 = arith.constant 0 : i32
    return %arg0, %c0_i32, %arg1 : i32, i32, i32
  }
  func.func @transform_3(%arg0: i32, %arg1: i32) -> (i32, i32, i32) {
    %c0_i32 = arith.constant 0 : i32
    %c0_i32_0 = arith.constant 0 : i32
    return %arg0, %c0_i32, %arg1 : i32, i32, i32
  }
}

</mosaic_0001>

<bundles_post_ra>
// kernel: tpu_custom_call.1
= control target key start
LH: loop header
LB: loop body
LE: loop exit
PB: predicated region body
PF: predicated region fallthrough
CT: control target
= control target key end

     0   :  { %9 = vsyncpa [#allocation3], 0  ;;  %s2720_s0 = inlined_call_operand.vmem [shape: f32[2,9,9,16], index: 0, kind: input, shape index: {}]   ;;  %s2721_s1 = inlined_call_operand.vmem [shape: f32[9,4,128], index: 1, kind: input, shape index: {}]   ;;  %s2722_s2 = inlined_call_operand.hbm [shape: f32[2,1,128], index: 2, kind: output, shape index: {0}]   ;;  %s2723_s3 = inlined_call_operand.hbm [shape: f32[2,1,128], index: 3, kind: output, shape index: {1}]  }
   0x1   :  { %11 = vsyncpa [#allocation3 + $0x1], 0 }
   0x2   :  { %12 = vsyncpa [#allocation5], 0 }
   0x3   :  { %14 = vsyncpa [#allocation5 + $0x1], 0  ;;  %s2240_s12 = smov 0   ;;  %s2242_s13 = smov 0  }
   0x4   :  { %s2244_s14 = smov 0   ;;  %s2246_s15 = smov 0  }
   0x5   :  { %s2248_s16 = smov 0   ;;  %s2250_s17 = smov 0  }
   0x6 LB: > { %s1666_s18 = sadd.s32 4294967295, %s2213_s17   ;;  %s1667_s19 = sadd.s32 4294967294, %s2213_s17   ;;  %s2213_s17 = sphi %s2250_s17, %s20_s17   ;;  %s2209_s16 = sphi %s2248_s16, %s2730_s16   ;;  %s2205_s15 = sphi %s2246_s15, %s2729_s15   ;;  %s2201_s14 = sphi %s2244_s14, %s2728_s14   ;;  %s2197_s13 = sphi %s2242_s13, %s2727_s13   ;;  %s2193_s12 = sphi %s2240_s12, %s2726_s12  }
   0x7   : > { %s32_s20 = sadd.s32 1, %s2209_s16  ;;  %s93_s21 = sadd.s32 1, %s2201_s14 }
   0x8   : > { %p34_p0 = scmp.ge.s32.totalorder %s32_s20, 2  ;;  %p103_p1 = scmp.ne.s32.totalorder %s2201_s14, %s2197_s13 }
   0x9   : > { %p104_p2 = scmp.eq.s32.totalorder %s1666_s18, 1  ;;  %p109_p3 = scmp.ne.s32.totalorder %s2197_s13, %s2193_s12 }
   0xa   : > { %s2732_s20 = smov (%p34_p0, %s32_s20), 0  ;;  %p110_p5 = scmp.eq.s32.totalorder %s1667_s19, 1 }
   0xb   : > { %p2280_p4 = por %p104_p2, %p103_p1  ;;  %s88_s23 = ssub.s32 %s2209_s16, %s2732_s20 }
   0xc   : > { %p1671_p6 = scmp.ge.s32.totalorder %s2213_s17, 1  ;;  %p91_p7 = scmp.eq.s32.totalorder %s88_s23, 0 }
   0xd   : > { %p2287_p8 = por %p110_p5, %p109_p3  ;;  %p171_p9 = scmp.lt.s32.totalorder %s2213_s17, 3 }
   0xe   : > { %s2293_s25 = scalar_select %p91_p7, %s2201_s14, %s93_s21  }
   0xf   : > { %p172_p10 = pnand %p1671_p6, %p171_p9 }
  0x10   : > { %p202_p11 = scmp.lt.s32.totalorder (!%p172_p10), %s2205_s15, 1  ;;  %v1673_v0 = vld [vmem:[%s2721_s1 + $0x4] sm:$0xf] (!%p172_p10)  ;;  %vm273_vm0 = vcmask (!%p172_p10), 1043456   ;;  %v2303_v1 = vld [vmem:[%s2721_s1 + $0x10] sm:$0xf] (!%p172_p10) }
  0x11   : > { %175 = sbr.rel (%p172_p10) target bundleno = 499 (0x1f3), region = 28  ;;  %1847 = vmatprep.subr.msk.mxu1 (!%p172_p10), %vm273_vm0, %v1673_v0  ;;  %1903 = vmatprep.subr.msk.mxu0 (!%p172_p10), %vm273_vm0, %v2303_v1  ;;  %s2215_s8 = smov (!%p172_p10), 124   ;;  %v2337_v6 = vld [vmem:[%s2721_s1] sm:$0xf] (!%p172_p10)  ;;  %v2342_v7 = vld [vmem:[%s2721_s1 + $0x14] sm:$0xf] (!%p172_p10) }
  0x12   : > { %1848 = vmatpush3.msk.msra.mxu1 (!%p172_p10), %vm273_vm0, %v1673_v0  ;;  %1904 = vmatpush3.msk.msra.mxu0 (!%p172_p10), %vm273_vm0, %v2303_v1  ;;  %s2216_s9 = smov (!%p172_p10), 116   ;;  %vm514_vm1 = vcmask (!%p172_p10), 1046528   ;;  %s2217_s21 = smov (!%p172_p10), 120   ;;  %vm256_vm2 = vcmask (!%p172_p10), 31744   ;;  %v1692_v47 = vld [vmem:[%s2721_s1 + $0x8] sm:$0xf] (!%p172_p10) }
  0x13   : > { %1861 = vmatprep.subr.msk.mxu1 (!%p172_p10), %vm273_vm0, %v2337_v6  ;;  %1917 = vmatprep.subr.msk.mxu0 (!%p172_p10), %vm273_vm0, %v2342_v7  ;;  %v1732_v50 = vld [vmem:[%s2721_s1 + $0x18] sm:$0xf] (!%p172_p10)  ;;  %v1742_v59 = vld [vmem:[%s2721_s1 + $0x1c] sm:$0xf] (!%p172_p10) }
  0x18   : > { %s203_s30 = scalar_select %p202_p11, %s2205_s15, 1 }
  0x1a   : > { %s2039_s4 = smul.u32 144, %s203_s30 }
  0x1c   : > { %s2314_s7 = scalar_lea.vmem %s2720_s0, %s2039_s4  ;;  %s2218_s4 = smov [#allocation2]  }
  0x1d   : > { %v2317_v2 = vld [vmem:[%s2314_s7] sm:$0xff]  ;;  %v2320_v3 = vld [vmem:[%s2314_s7 + $0x10] sm:$0xff]  ;;  %v212_v5 = vld [vmem:[%s2314_s7 + $0x8] sm:$0x1]  ;;  %s2107_s5 = sshll.u32 %s2218_s4, 4  ;;  %s2108_s5 = int_to_ptr.vmem [resolvable:$false] %s2107_s5 }
  0x1e   : > { %240 = vrot.lane.b32.xlu0 %v2317_v2, %s2215_s8  ;;  %242 = vrot.lane.b32.xlu1 %v2320_v3, %s2215_s8  ;;  %v2331_v4 = vld [vmem:[%s2314_s7 + $0x20] sm:$0xff]  ;;  %v2353_v8 = vld [vmem:[%s2314_s7 + $0x30] sm:$0xff]  ;;  %v515_v9 = vrot.slane %v2317_v2, 1  ;;  %v516_v10 = vrot.slane %v212_v5, 1  ;;  %v518_v14 = vrot.slane %v2320_v3, 1  ;;  %s2109_s6 = scalar_lea.vmem %s2108_s5, 32 }
  0x1f   : > { %v214_v11 = vld [vmem:[%s2314_s7 + $0x18] sm:$0x1]  ;;  %v2362_v12 = vld [vmem:[%s2314_s7 + $0x40] sm:$0xff]  ;;  %v216_v16 = vld [vmem:[%s2314_s7 + $0x28] sm:$0x1]  ;;  %v521_v19 = vrot.slane %v2331_v4, 1 }
  0x20   : > { %v2365_v13 = vsel %vm514_vm1, %v515_v9, %v516_v10  ;;  %v519_v15 = vrot.slane %v214_v11, 1  ;;  %v2374_v17 = vld [vmem:[%s2314_s7 + $0x50] sm:$0xff]  ;;  %v522_v20 = vrot.slane %v216_v16, 1  ;;  %v218_v21 = vld [vmem:[%s2314_s7 + $0x38] sm:$0x1]  ;;  %v2386_v22 = vld [vmem:[%s2314_s7 + $0x60] sm:$0xff] }
  0x21   : > { %v524_v24 = vrot.slane %v2353_v8, 1  ;;  %v525_v25 = vrot.slane %v218_v21, 1  ;;  %v220_v26 = vld [vmem:[%s2314_s7 + $0x48] sm:$0x1]  ;;  %v222_v27 = vld [vmem:[%s2314_s7 + $0x58] sm:$0x1] }
  0x22   : > { %825 = vrot.lane.b32.xlu0 %v2317_v2, %s2216_s9  ;;  %827 = vrot.lane.b32.xlu1 %v2320_v3, %s2216_s9  ;;  %v2377_v18 = vsel %vm514_vm1, %v518_v14, %v519_v15  ;;  %v2389_v23 = vsel %vm514_vm1, %v521_v19, %v522_v20  ;;  %v527_v28 = vrot.slane %v2362_v12, 1  ;;  %v528_v29 = vrot.slane %v220_v26, 1  ;;  %v2400_v30 = vld [vmem:[%s2314_s7 + $0x70] sm:$0xff]  ;;  %v224_v34 = vld [vmem:[%s2314_s7 + $0x68] sm:$0x1] }
  0x23   : > { %v2403_v31 = vsel %vm514_vm1, %v524_v24, %v525_v25  ;;  %v530_v32 = vrot.slane %v2374_v17, 1  ;;  %v531_v33 = vrot.slane %v222_v27, 1  ;;  %v226_v35 = vld [vmem:[%s2314_s7 + $0x78] sm:$0x1]  ;;  %v533_v37 = vrot.slane %v2386_v22, 1  ;;  %v2443_v44 = vld [vmem:[%s2314_s7 + $0x80] sm:$0xff] }
  0x24   : > { %v2413_v36 = vsel %vm514_vm1, %v527_v28, %v528_v29  ;;  %v534_v39 = vrot.slane %v224_v34, 1  ;;  %v536_v40 = vrot.slane %v2400_v30, 1  ;;  %v537_v41 = vrot.slane %v226_v35, 1  ;;  %v1752_v9 = vld [vmem:[%s2721_s1 + $0x20] sm:$0xf] }
  0x25   : > { %v2417_v38 = vsel %vm514_vm1, %v530_v32, %v531_v33  ;;  %v1367_v19 = vrot.slane %v2443_v44, 1 }
  0x26   : > { %244 = vrot.lane.b32.xlu0 %v2331_v4, %s2215_s8  ;;  %829 = vrot.lane.b32.xlu1 %v2331_v4, %s2216_s9  ;;  %v2425_v42 = vsel %vm514_vm1, %v533_v37, %v534_v39  ;;  %v2428_v43 = vsel %vm514_vm1, %v536_v40, %v537_v41 }
  0x2a   : > { %246 = vrot.lane.b32.xlu0 %v2353_v8, %s2215_s8  ;;  %831 = vrot.lane.b32.xlu1 %v2353_v8, %s2216_s9 }
  0x2e   : > { %248 = vrot.lane.b32.xlu0 %v2362_v12, %s2215_s8  ;;  %975 = vrot.lane.b32.xlu1 %v2365_v13, %s2217_s21 }
  0x32   : > { %250 = vrot.lane.b32.xlu0 %v2374_v17, %s2215_s8  ;;  %977 = vrot.lane.b32.xlu1 %v2377_v18, %s2217_s21 }
  0x36   : > { %252 = vrot.lane.b32.xlu0 %v2386_v22, %s2215_s8  ;;  %979 = vrot.lane.b32.xlu1 %v2389_v23, %s2217_s21 }
  0x3a   : > { %254 = vrot.lane.b32.xlu0 %v2400_v30, %s2215_s8  ;;  %981 = vrot.lane.b32.xlu1 %v2403_v31, %s2217_s21 }
  0x3e   : > { %983 = vrot.lane.b32.xlu0 %v2413_v36, %s2217_s21  ;;  %985 = vrot.lane.b32.xlu1 %v2417_v38, %s2217_s21 }
  0x42   : > { %987 = vrot.lane.b32.xlu0 %v2425_v42, %s2217_s21  ;;  %989 = vrot.lane.b32.xlu1 %v2428_v43, %s2217_s21 }
  0x46   : > { %675 = vrot.lane.b32.xlu0 %v2317_v2, %s2217_s21  ;;  %677 = vrot.lane.b32.xlu1 %v2320_v3, %s2217_s21 }
  0x4a   : > { %679 = vrot.lane.b32.xlu0 %v2331_v4, %s2217_s21  ;;  %681 = vrot.lane.b32.xlu1 %v2353_v8, %s2217_s21 }
  0x4e   : > { %1246 = vrot.lane.b32.xlu0 %v2443_v44, %s2215_s8  ;;  %683 = vrot.lane.b32.xlu1 %v2362_v12, %s2217_s21 }
  0x52   : > { %685 = vrot.lane.b32.xlu0 %v2374_v17, %s2217_s21  ;;  %687 = vrot.lane.b32.xlu1 %v2386_v22, %s2217_s21 }
  0x56   : > { %689 = vrot.lane.b32.xlu0 %v2400_v30, %s2217_s21  ;;  %833 = vrot.lane.b32.xlu1 %v2362_v12, %s2216_s9 }
  0x5a   : > { %835 = vrot.lane.b32.xlu0 %v2374_v17, %s2216_s9  ;;  %837 = vrot.lane.b32.xlu1 %v2386_v22, %s2216_s9 }
  0x5e   : > { %839 = vrot.lane.b32.xlu0 %v2400_v30, %s2216_s9  ;;  %s1762_s9 = sshll.u32 %s2205_s15, 4 }
  0x5f   : > { %s2641_s26 = scalar_lea.hbm %s2722_s2, %s1762_s9  ;;  %s2648_s28 = scalar_lea.hbm %s2723_s3, %s1762_s9 }
  0x90   : > { %v241_v45 = vpop.permute.xlu0 %240  ;;  %v2463_v46 = vpop.permute.xlu1 %242 }
  0x91   : > { %1849 = vmatprep.mubr.msk.f32.mxu1 %vm256_vm2, %v241_v45 }
  0x92   : > { %1850 = vmatmul.mubr.msk.f32.vlgmr.msra.gmra.mrb[0].mxu1 %vm256_vm2, %v2463_v46 }
  0x93   : > { %1862 = vmatpush3.msk.msra.mxu1 %vm273_vm0, %v2337_v6  ;;  %v1702_v6 = vld [vmem:[%s2721_s1 + $0xc] sm:$0xf] }
  0x94   : > { %v826_v48 = vpop.permute.xlu0 %825  ;;  %v828_v49 = vpop.permute.xlu1 %827  ;;  %1875 = vmatprep.subr.msk.mxu1 %vm273_vm0, %v1692_v47 }
  0x95   : > { %1905 = vmatprep.mubr.msk.f32.mxu0 %vm256_vm2, %v826_v48 }
  0x96   : > { %1906 = vmatmul.mubr.msk.f32.vlgmr.msra.gmra.mrb[0].mxu0 %vm256_vm2, %v828_v49 }
  0x97   : > { %1918 = vmatpush3.msk.msra.mxu0 %vm273_vm0, %v2342_v7 }
  0x98   : > { %v2481_v51 = vpop.permute.xlu0 %244  ;;  %v830_v52 = vpop.permute.xlu1 %829  ;;  %1931 = vmatprep.subr.msk.mxu0 %vm273_vm0, %v1732_v50 }
  0x99   : > { %1852 = vmatprep.mubr.msk.f32.mxu1 %vm256_vm2, %v2481_v51  ;;  %1908 = vmatprep.mubr.msk.f32.mxu0 %vm256_vm2, %v830_v52 }
  0x9c   : > { %v2487_v53 = vpop.permute.xlu0 %246  ;;  %v832_v54 = vpop.permute.xlu1 %831 }
  0x9d   : > { %1853 = vmatmul.mubr.msk.f32.gmra.mrb[2].mxu1 %vm256_vm2, %v2487_v53  ;;  %1909 = vmatmul.mubr.msk.f32.gmra.mrb[2].mxu0 %vm256_vm2, %v832_v54 }
  0xa0   : > { %v2492_v55 = vpop.permute.xlu0 %248  ;;  %v976_v56 = vpop.permute.xlu1 %975 }
  0xa1   : > { %1855 = vmatprep.mubr.msk.f32.mxu1 %vm256_vm2, %v2492_v55  ;;  %1919 = vmatprep.mubr.msk.f32.mxu0 %vm256_vm2, %v976_v56 }
  0xa4   : > { %v2497_v57 = vpop.permute.xlu0 %250  ;;  %v978_v58 = vpop.permute.xlu1 %977 }
  0xa5   : > { %1856 = vmatmul.mubr.msk.f32.gmra.mrb[4].mxu1 %vm256_vm2, %v2497_v57  ;;  %1920 = vmatmul.mubr.msk.f32.vlgmr.msra.gmra.mrb[0].mxu0 %vm256_vm2, %v978_v58 }
  0xa6   : > { %1932 = vmatpush3.msk.msra.mxu0 %vm273_vm0, %v1732_v50 }
  0xa7   : > { %1945 = vmatprep.subr.msk.mxu0 %vm273_vm0, %v1742_v59 }
  0xa8   : > { %v2507_v60 = vpop.permute.xlu0 %252  ;;  %v980_v61 = vpop.permute.xlu1 %979 }
  0xa9   : > { %1858 = vmatprep.mubr.msk.f32.mxu1 %vm256_vm2, %v2507_v60  ;;  %1922 = vmatprep.mubr.msk.f32.mxu0 %vm256_vm2, %v980_v61 }
  0xac   : > { %v2512_v62 = vpop.permute.xlu0 %254  ;;  %v982_v63 = vpop.permute.xlu1 %981 }
  0xad   : > { %1859 = vmatmul.mubr.msk.f32.gmra.mrb[6].mxu1 %vm256_vm2, %v2512_v62  ;;  %1923 = vmatmul.mubr.msk.f32.gmra.mrb[2].mxu0 %vm256_vm2, %v982_v63 }
  0xae   : > { %1863 = vmatprep.mubr.msk.f32.mxu1 %vm256_vm2, %v2317_v2 }
  0xb0   : > { %v984_v0 = vpop.permute.xlu0 %983  ;;  %v986_v5 = vpop.permute.xlu1 %985 }
  0xb1   : > { %1864 = vmatmul.mubr.msk.f32.vlgmr.msra.gmra.mrb[0].mxu1 %vm256_vm2, %v2320_v3  ;;  %1925 = vmatprep.mubr.msk.f32.mxu0 %vm256_vm2, %v984_v0 }
  0xb2   : > { %1876 = vmatpush3.msk.msra.mxu1 %vm273_vm0, %v1692_v47  ;;  %1926 = vmatmul.mubr.msk.f32.gmra.mrb[4].mxu0 %vm256_vm2, %v986_v5 }
  0xb3   : > { %1866 = vmatprep.mubr.msk.f32.mxu1 %vm256_vm2, %v2331_v4  ;;  %1889 = vmatprep.subr.msk.mxu1 %vm273_vm0, %v1702_v6 }
  0xb4   : > { %v988_v2 = vpop.permute.xlu0 %987  ;;  %v990_v7 = vpop.permute.xlu1 %989 }
  0xb5   : > { %1867 = vmatmul.mubr.msk.f32.gmra.mrb[2].mxu1 %vm256_vm2, %v2353_v8  ;;  %1928 = vmatprep.mubr.msk.f32.mxu0 %vm256_vm2, %v988_v2 }
  0xb6   : > { %1929 = vmatmul.mubr.msk.f32.gmra.mrb[6].mxu0 %vm256_vm2, %v990_v7  ;;  %1869 = vmatprep.mubr.msk.f32.mxu1 %vm256_vm2, %v2362_v12 }
  0xb7   : > { %1933 = vmatprep.mubr.msk.f32.mxu0 %vm256_vm2, %v2320_v3 }
  0xb8   : > { %v676_v3 = vpop.permute.xlu0 %675 }
  0xb9   : > { %1870 = vmatmul.mubr.msk.f32.gmra.mrb[4].mxu1 %vm256_vm2, %v2374_v17 }
  0xba   : > { %1934 = vmatmul.mubr.msk.f32.vlgmr.msra.gmra.mrb[0].mxu0 %vm256_vm2, %v2331_v4  ;;  %1872 = vmatprep.mubr.msk.f32.mxu1 %vm256_vm2, %v2386_v22  ;;  %v678_v4 = vpop.permute.xlu1 %677 }
  0xbb   : > { %1946 = vmatpush3.msk.msra.mxu0 %vm273_vm0, %v1742_v59  ;;  %1936 = vmatprep.mubr.msk.f32.mxu0 %vm256_vm2, %v2353_v8 }
  0xbc   : > { %1959 = vmatprep.subr.msk.mxu0 %vm273_vm0, %v1752_v9  ;;  %v680_v8 = vpop.permute.xlu0 %679 }
  0xbd   : > { %1873 = vmatmul.mubr.msk.f32.gmra.mrb[6].mxu1 %vm256_vm2, %v2400_v30 }
  0xbe   : > { %1937 = vmatmul.mubr.msk.f32.gmra.mrb[2].mxu0 %vm256_vm2, %v2362_v12  ;;  %1877 = vmatprep.mubr.msk.f32.mxu1 %vm256_vm2, %v2365_v13  ;;  %v682_v10 = vpop.permute.xlu1 %681 }
  0xbf   : > { %1939 = vmatprep.mubr.msk.f32.mxu0 %vm256_vm2, %v2374_v17  ;;  %v228_v17 = vld [vmem:[%s2314_s7 + $0x88] sm:$0x1]  ;;  %s2631_s7 = sand.u32 1, %s2197_s13  }
  0xc0   : > { %v1247_v11 = vpop.permute.xlu0 %1246  ;;  %v1368_v20 = vrot.slane %v228_v17, 1  ;;  %s195_s10 = scalar_lea.vmem [#allocation2], %s2631_s7  ;;  %s201_s18 = scalar_lea.vmem [#allocation4], %s2631_s7 }
  0xc1   : > { %1878 = vmatmul.mubr.msk.f32.vlgmr.msra.gmra.mrb[0].mxu1 %vm256_vm2, %v2377_v18  ;;  %s1544_s11 = sshll.u32 %s195_s10, 4  ;;  %s1558_s19 = sshll.u32 %s201_s18, 4  ;;  %s2643_s11 = int_to_ptr.vmem [resolvable:$true] %s1544_s11  ;;  %s2650_s19 = int_to_ptr.vmem [resolvable:$true] %s1558_s19 }
  0xc2   : > { %1890 = vmatpush3.msk.msra.mxu1 %vm273_vm0, %v1702_v6  ;;  %1940 = vmatmul.mubr.msk.f32.gmra.mrb[4].mxu0 %vm256_vm2, %v2386_v22  ;;  %v684_v12 = vpop.permute.xlu1 %683  ;;  %v1369_v22 = vsel %vm514_vm1, %v1367_v19, %v1368_v20  ;;  %s1527_s29 = scalar_lea.sflag [#allocation3], %s2631_s7  ;;  %s2103_s30 = scalar_lea.vmem %s2643_s11, 16 }
  0xc3   : > { %1880 = vmatprep.mubr.msk.f32.mxu1 %vm256_vm2, %v2389_v23  ;;  %1942 = vmatprep.mubr.msk.f32.mxu0 %vm256_vm2, %v2400_v30  ;;  %p2104_p12 = scmp.ne.s32.totalorder %s2643_s11, %s2103_s30  ;;  %p2110_p1 = scmp.lt.s32.totalorder %s2643_s11, %s2108_s5 }
  0xc4   : > { %1973 = vmatprep.subr.msk.mxu1 %vm273_vm0, %v2303_v1  ;;  %v686_v13 = vpop.permute.xlu0 %685  ;;  %p2111_p2 = scmp.lt.s32.totalorder %s2109_s6, %s2103_s30 }
  0xc5   : > { %1881 = vmatmul.mubr.msk.f32.gmra.mrb[2].mxu1 %vm256_vm2, %v2403_v31  ;;  %p2105_p13 = pnand %p2104_p12, %p2280_p4 }
  0xc6   : > { %1943 = vmatmul.mubr.msk.f32.gmra.mrb[6].mxu0 %vm256_vm2, %v2443_v44  ;;  %1883 = vmatprep.mubr.msk.f32.mxu1 %vm256_vm2, %v2413_v36  ;;  %v688_v14 = vpop.permute.xlu1 %687  ;;  %p2112_p3 = por %p2111_p2, %p2110_p1 }
  0xc7   : > { %1947 = vmatprep.mubr.msk.f32.mxu0 %vm256_vm2, %v2463_v46  ;;  %p2106_p0 = pneg %p2105_p13 }
  0xc8   : > { %v690_v15 = vpop.permute.xlu0 %689 }
  0xc9   : > { %1884 = vmatmul.mubr.msk.f32.gmra.mrb[4].mxu1 %vm256_vm2, %v2417_v38  ;;  %p2113_p5 = pnand %p2112_p3, %p2106_p0 }
  0xca   : > { %1948 = vmatmul.mubr.msk.f32.vlgmr.msra.gmra.mrb[0].mxu0 %vm256_vm2, %v2481_v51  ;;  %1886 = vmatprep.mubr.msk.f32.mxu1 %vm256_vm2, %v2425_v42 }
  0xcb   : > { %1960 = vmatpush3.msk.msra.mxu0 %vm273_vm0, %v1752_v9  ;;  %1950 = vmatprep.mubr.msk.f32.mxu0 %vm256_vm2, %v2487_v53 }
  0xcc   : > { %v836_v16 = vpop.permute.xlu0 %835 }
  0xcd   : > { %1887 = vmatmul.mubr.msk.f32.gmra.mrb[6].mxu1 %vm256_vm2, %v2428_v43 }
  0xce   : > { %1891 = vmatprep.mubr.msk.f32.mxu1 %vm256_vm2, %v676_v3  ;;  %1951 = vmatmul.mubr.msk.f32.gmra.mrb[2].mxu0 %vm256_vm2, %v2492_v55 }
  0xcf   : > { %1953 = vmatprep.mubr.msk.f32.mxu0 %vm256_vm2, %v2497_v57 }
  0xd0   : > { %v840_v21 = vpop.permute.xlu0 %839 }
  0xd1   : > { %1892 = vmatmul.mubr.msk.f32.vlgmr.msra.gmra.mrb[0].mxu1 %vm256_vm2, %v678_v4 }
  0xd2   : > { %1894 = vmatprep.mubr.msk.f32.mxu1 %vm256_vm2, %v680_v8  ;;  %1974 = vmatpush3.msk.msra.mxu1 %vm273_vm0, %v2303_v1  ;;  %v834_v1 = vpop.permute.xlu1 %833 }
  0xd3   : > { %1954 = vmatmul.mubr.msk.f32.gmra.mrb[4].mxu0 %vm256_vm2, %v2507_v60 }
  0xd4   : > { %1956 = vmatprep.mubr.msk.f32.mxu0 %vm256_vm2, %v2512_v62 }
  0xd5   : > { %1895 = vmatmul.mubr.msk.f32.gmra.mrb[2].mxu1 %vm256_vm2, %v682_v10 }
  0xd6   : > { %1897 = vmatprep.mubr.msk.f32.mxu1 %vm256_vm2, %v684_v12 }
  0xd7   : > { %1957 = vmatmul.mubr.msk.f32.gmra.mrb[6].mxu0 %vm256_vm2, %v1247_v11 }
  0xd8   : > { %1961 = vmatprep.mubr.msk.f32.mxu0 %vm256_vm2, %v2377_v18  ;;  %v838_v18 = vpop.permute.xlu1 %837 }
  0xd9   : > { %1898 = vmatmul.mubr.msk.f32.gmra.mrb[4].mxu1 %vm256_vm2, %v686_v13 }
  0xda   : > { %1900 = vmatprep.mubr.msk.f32.mxu1 %vm256_vm2, %v688_v14 }
  0xdb   : > { %1962 = vmatmul.mubr.msk.f32.vlgmr.msra.gmra.mrb[0].mxu0 %vm256_vm2, %v2389_v23 }
  0xdc   : > { %1964 = vmatprep.mubr.msk.f32.mxu0 %vm256_vm2, %v2403_v31 }
  0xdd   : > { %1901 = vmatmul.mubr.msk.f32.gmra.mrb[6].mxu1 %vm256_vm2, %v690_v15 }
  0xde   : > { %1911 = vmatprep.mubr.msk.f32.mxu1 %vm256_vm2, %v834_v1 }
  0xdf   : > { %1965 = vmatmul.mubr.msk.f32.gmra.mrb[2].mxu0 %vm256_vm2, %v2413_v36 }
  0xe0   : > { %1967 = vmatprep.mubr.msk.f32.mxu0 %vm256_vm2, %v2417_v38 }
  0xe1   : > { %1912 = vmatmul.mubr.msk.f32.vlgmr.msra.gmra.mrb[4].mxu1 %vm256_vm2, %v836_v16 }
  0xe2   : > { %1914 = vmatprep.mubr.msk.f32.mxu1 %vm256_vm2, %v838_v18 }
  0xe3   : > { %1968 = vmatmul.mubr.msk.f32.gmra.mrb[4].mxu0 %vm256_vm2, %v2425_v42 }
  0xe4   : > { %1970 = vmatprep.mubr.msk.f32.mxu0 %vm256_vm2, %v2428_v43 }
  0xe5   : > { %1915 = vmatmul.mubr.msk.f32.gmra.mrb[6].mxu1 %vm256_vm2, %v840_v21 }
  0xe7   : > { %1971 = vmatmul.mubr.msk.f32.gmra.mrb[6].mxu0 %vm256_vm2, %v1369_v22 }
 0x1a4   : > { %v1893_v23 = vpop.f32.mrb[0].mxu1 }
 0x1a5   : > { %v776_v24 = vpop.f32.mrb[1].mxu1 }
 0x1a8   : > { %v1896_v25 = vpop.f32.mrb[2].mxu1 }
 0x1a9   : > { %v786_v26 = vpop.f32.mrb[3].mxu1 }
 0x1ae   : > { %v1963_v27 = vpop.f32.mrb[0].mxu0 }
 0x1af   : > { %v1975_v28 = vadd.f32 %v1963_v27, %v1893_v23  ;;  %v1443_v29 = vpop.f32.mrb[1].mxu0 }
 0x1b0   : > { %v1976_v30 = vadd.f32 %v1443_v29, %v776_v24 }
 0x1b1   : > { %v1505_v31 = vmul.f32 %v1975_v28, %v1975_v28 }
 0x1b2   : > { %v1490_v32 = vadd.f32 %v1976_v30, %v1975_v28  ;;  %v1504_v33 = vmul.f32 %v1976_v30, %v1976_v30  ;;  %v1966_v34 = vpop.f32.mrb[2].mxu0 }
 0x1b3   : > { %v1977_v35 = vadd.f32 %v1966_v34, %v1896_v25  ;;  %v1453_v36 = vpop.f32.mrb[3].mxu0 }
 0x1b4   : > { %v1512_v37 = vadd.f32 %v1505_v31, %v1504_v33  ;;  %v1978_v38 = vadd.f32 %v1453_v36, %v786_v26  ;;  %v1913_v39 = vpop.f32.mrb[4].mxu1 }
 0x1b5   : > { %v946_v40 = vpop.f32.mrb[5].mxu1  ;;  %v1507_v46 = vmul.f32 %v1977_v35, %v1977_v35 }
 0x1b6   : > { %v1491_v41 = vadd.f32 %v1978_v38, %v1490_v32  ;;  %v1506_v42 = vmul.f32 %v1978_v38, %v1978_v38  ;;  %v1969_v43 = vpop.f32.mrb[4].mxu0 }
 0x1b7   : > { %v1979_v44 = vadd.f32 %v1969_v43, %v1913_v39  ;;  %v1463_v45 = vpop.f32.mrb[5].mxu0 }
 0x1b8   : > { %v1513_v47 = vadd.f32 %v1512_v37, %v1506_v42  ;;  %v1980_v48 = vadd.f32 %v1463_v45, %v946_v40  ;;  %v1492_v49 = vadd.f32 %v1977_v35, %v1491_v41  ;;  %v1916_v50 = vpop.f32.mrb[6].mxu1 }
 0x1b9   : > { %v956_v51 = vpop.f32.mrb[7].mxu1  ;;  %v1509_v58 = vmul.f32 %v1979_v44, %v1979_v44 }
 0x1ba   : > { %v1493_v52 = vadd.f32 %v1980_v48, %v1492_v49  ;;  %v1508_v53 = vmul.f32 %v1980_v48, %v1980_v48  ;;  %v1514_v54 = vadd.f32 %v1513_v47, %v1507_v46  ;;  %v1972_v55 = vpop.f32.mrb[6].mxu0 }
 0x1bb   : > { %v1981_v56 = vadd.f32 %v1972_v55, %v1916_v50  ;;  %v1473_v57 = vpop.f32.mrb[7].mxu0 }
 0x1bc   : > { %v1515_v59 = vadd.f32 %v1514_v54, %v1508_v53  ;;  %v1982_v60 = vadd.f32 %v1473_v57, %v956_v51  ;;  %v1494_v61 = vadd.f32 %v1979_v44, %v1493_v52 }
 0x1bd   : > { %v1511_v5 = vmul.f32 %v1981_v56, %v1981_v56 }
 0x1be   : > { %v1495_v62 = vadd.f32 %v1982_v60, %v1494_v61  ;;  %v1510_v63 = vmul.f32 %v1982_v60, %v1982_v60  ;;  %v1516_v0 = vadd.f32 %v1515_v59, %v1509_v58 }
 0x1c0   : > { %v1496_v6 = vadd.f32 %v1981_v56, %v1495_v62  ;;  %v1517_v2 = vadd.f32 %v1516_v0, %v1510_v63 }
 0x1c2   : > { %v1497_v7 = vrot.slane %v1496_v6, 4  ;;  %v1518_v9 = vadd.f32 %v1517_v2, %v1511_v5 }
 0x1c4   : > { %v1498_v3 = vadd.f32 %v1497_v7, %v1496_v6  ;;  %v1519_v4 = vrot.slane %v1518_v9, 4 }
 0x1c6   : > { %v1499_v8 = vrot.slane %v1498_v3, 2  ;;  %v1520_v10 = vadd.f32 %v1519_v4, %v1518_v9 }
 0x1c8   : > { %v1500_v11 = vadd.f32 %v1499_v8, %v1498_v3  ;;  %v1521_v12 = vrot.slane %v1520_v10, 2 }
 0x1ca   : > { %v1501_v13 = vrot.slane %v1500_v11, 1  ;;  %v1522_v14 = vadd.f32 %v1521_v12, %v1520_v10 }
 0x1cc   : > { %v1502_v15 = vadd.f32 %v1501_v13, %v1500_v11  ;;  %v1523_v1 = vrot.slane %v1522_v14, 1 }
 0x1ce   : > { %1503 = vst [vmem:[%s195_s10] sm:$0x1] %v1502_v15  ;;  %v1524_v16 = vadd.f32 %v1523_v1, %v1522_v14 }
 0x1cf   : > { %2116 = shalt.err (!%p2113_p5)
}
 0x1d0   : > { %s2117_s8 = scalar_lea.hbm %s2641_s26, 16  ;;  %s2121_s21 = scalar_lea.hbm %s2722_s2, 32 }
 0x1d1   : > { %p2118_p6 = scmp.ne.s32.totalorder %s2641_s26, %s2117_s8  ;;  %p2122_p10 = scmp.lt.u32.totalorder %s2641_s26, %s2722_s2 }
 0x1d2   : > { %p2123_p11 = scmp.lt.u32.totalorder %s2121_s21, %s2117_s8  ;;  %p2125_p13 = scmp.lt.u32.totalorder %s2117_s8, %s2641_s26 }
 0x1d3   : > { %p2119_p7 = pnand %p2118_p6, %p2280_p4 }
 0x1d4   : > { %p2124_p12 = por %p2123_p11, %p2122_p10 }
 0x1d5   : > { %p2120_p9 = pneg %p2119_p7 }
 0x1d6   : > { %p2126_p0 = por %p2125_p13, %p2124_p12 }
 0x1d8   : > { %p2127_p1 = pnand %p2126_p0, %p2120_p9 }
 0x1da   : > { %2130 = shalt.err (!%p2127_p1)
}
 0x1db   : > { %2040 = dma.vmem_to_hbm [thread:$0]  (%p2280_p4), %s2643_s11, 16, %s2641_s26, %s1527_s29   ;;  %1525 = vst [vmem:[%s201_s18] sm:$0x1] %v1524_v16 }
 0x1dc   : > { %s1531_s27 = scalar_lea.sflag [#allocation5], %s2631_s7  ;;  %s2131_s30 = scalar_lea.vmem %s2650_s19, 16 }
 0x1dd   : > { %p2132_p2 = scmp.ne.s32.totalorder %s2650_s19, %s2131_s30  ;;  %s2219_s4 = smov [#allocation4]  }
 0x1de   : > { %s2135_s5 = sshll.u32 %s2219_s4, 4  ;;  %s2136_s5 = int_to_ptr.vmem [resolvable:$false] %s2135_s5 }
 0x1df   : > { %p2133_p3 = pnand %p2132_p2, %p2280_p4  ;;  %s2137_s6 = scalar_lea.vmem %s2136_s5, 32 }
 0x1e0   : > { %p2138_p6 = scmp.lt.s32.totalorder %s2650_s19, %s2136_s5  ;;  %p2139_p7 = scmp.lt.s32.totalorder %s2137_s6, %s2131_s30 }
 0x1e1   : > { %p2134_p5 = pneg %p2133_p3 }
 0x1e2   : > { %p2140_p9 = por %p2139_p7, %p2138_p6 }
 0x1e4   : > { %p2141_p10 = pnand %p2140_p9, %p2134_p5 }
 0x1e6   : > { %2144 = shalt.err (!%p2141_p10)
}
 0x1e7   : > { %s2145_s7 = scalar_lea.hbm %s2648_s28, 16  ;;  %s2149_s26 = scalar_lea.hbm %s2723_s3, 32 }
 0x1e8   : > { %p2146_p11 = scmp.ne.s32.totalorder %s2648_s28, %s2145_s7  ;;  %p2150_p0 = scmp.lt.u32.totalorder %s2648_s28, %s2723_s3 }
 0x1e9   : > { %p2151_p1 = scmp.lt.u32.totalorder %s2149_s26, %s2145_s7  ;;  %p2153_p3 = scmp.lt.u32.totalorder %s2145_s7, %s2648_s28 }
 0x1ea   : > { %p2147_p12 = pnand %p2146_p11, %p2280_p4 }
 0x1eb   : > { %p2152_p2 = por %p2151_p1, %p2150_p0 }
 0x1ec   : > { %p2148_p13 = pneg %p2147_p12 }
 0x1ed   : > { %p2154_p5 = por %p2153_p3, %p2152_p2 }
 0x1ef   : > { %p2155_p6 = pnand %p2154_p5, %p2148_p13 }
 0x1f1   : > { %2158 = shalt.err (!%p2155_p6)
}
 0x1f2   : > { %2041 = dma.vmem_to_hbm [thread:$0]  (%p2280_p4), %s2650_s19, 16, %s2648_s28, %s1531_s27  }
 0x1f3 PF: > { %p2051_p7 = scmp.ge.s32.totalorder %s2213_s17, 2  ;;  %s1570_s9 = sand.u32 1, %s2193_s12  }
 0x1f4   : > { %s1571_s10 = scalar_lea.sflag [#allocation3], %s1570_s9 }
 0x1f5   : > { %p2045_p9 = pnand %p2051_p7, %p2287_p8 }
 0x1f7   : > { %2184 = dma.done.wait (!%p2045_p9), %s1571_s10, 16  }
 0x1f8   : > { %2186 = vsyncadd (!%p2045_p9), %s1571_s10, 4294967280  ;;  %s1579_s21 = scalar_lea.sflag [#allocation5], %s1570_s9 }
 0x1f9   : > { %2188 = dma.done.wait (!%p2045_p9), %s1579_s21, 16  }
 0x1fa   : > { %2190 = vsyncadd (!%p2045_p9), %s1579_s21, 4294967280  ;;  %s20_s17 = sadd.s32 1, %s2213_s17   ;;  %s2726_s12 = smov %s2197_s13 }
 0x1fb   : > { %p17_p10 = scmp.ge.s32.totalorder %s20_s17, 4   ;;  %s2727_s13 = smov %s2201_s14 }
 0x1fc   : > { %s2728_s14 = smov %s2293_s25  ;;  %s2729_s15 = smov %s2209_s16 }
 0x1fd   : > { %s2730_s16 = smov %s2732_s20  ;;  %19 = sbr.rel (!%p17_p10) target bundleno = 6 (0x6), region = 91 }
 0x204   :  { %1583 = vsyncpa [#allocation3], 1 }
 0x205   :  { %1585 = vsyncpa [#allocation3 + $0x1], 1 }
 0x206   :  { %1586 = vsyncpa [#allocation5], 1 }
 0x207   :  { %1588 = vsyncpa [#allocation5 + $0x1], 1 }

</bundles_post_ra>
